<compile_context>
chip_gen: v6e
topology: v6e:2x2x1
jax: 0.10.0
libtpu: 0.0.40
codegen_flags: <defaults>
</compile_context>

<pallas_src>
import functools

import jax
import jax.numpy as jnp
from jax import lax
from jax.experimental import pallas as pl
from jax.experimental.pallas import tpu as pltpu

_LANE = 128
_SUBLANE = 8


def _round_up(x, m):
    return -(-x // m) * m


def _xcorr_kernel(x1_ref, x2_ref, o_ref,
                  s1_ref, s2_ref, s11_ref, s22_ref, s12_ref,
                  *, c: int, eps: float, normalize: bool,
                  hw_total: int, thw: int, kt: int, needs_mask: bool):
    """One grid step: (1, BT*C, THW) slabs of x1/x2 -> per-batch scores.

    Grid is (batch_groups, hw_tiles). Per-row moments accumulate over the
    hw_tiles ("arbitrary") axis in small VMEM scratch; scores are emitted on
    the last hw tile.
    """
    x1 = x1_ref[0].astype(jnp.float32)          # (BTC, THW)
    x2 = x2_ref[0].astype(jnp.float32)
    btc = x1.shape[0]
    bt = btc // c

    if needs_mask:
        # Last HW tile is partial: zero out-of-range lanes (zeros contribute
        # nothing to any of the five moments).
        lane = lax.broadcasted_iota(jnp.int32, x1.shape, 1)
        valid = (pl.program_id(1) * thw + lane) < hw_total
        x1 = jnp.where(valid, x1, jnp.float32(0.0))
        x2 = jnp.where(valid, x2, jnp.float32(0.0))

    # Per-(batch, channel) row moments for this HW tile (lane reductions).
    p12 = jnp.sum(x1 * x2, axis=-1, keepdims=True)             # (BTC, 1)
    if normalize:
        p1 = jnp.sum(x1, axis=-1, keepdims=True)
        p2 = jnp.sum(x2, axis=-1, keepdims=True)
        p11 = jnp.sum(x1 * x1, axis=-1, keepdims=True)
        p22 = jnp.sum(x2 * x2, axis=-1, keepdims=True)

    def finalize(s12, s1=None, s2=None, s11=None, s22=None):
        inv_hw = jnp.float32(1.0 / hw_total)
        if normalize:
            m1 = s1 * inv_hw
            m2 = s2 * inv_hw
            # Biased variance (PyTorch InstanceNorm2d).  Single-pass
            # E[x^2]-E[x]^2 is clamped at 0 against cancellation; inputs with
            # |mean| >> std can still lose precision vs. a two-pass norm.
            var1 = jnp.maximum(s11 * inv_hw - m1 * m1, 0.0)
            var2 = jnp.maximum(s22 * inv_hw - m2 * m2, 0.0)
            cov = s12 * inv_hw - m1 * m2
            contrib = (cov
                       * lax.rsqrt(var1 + jnp.float32(eps))
                       * lax.rsqrt(var2 + jnp.float32(eps)))    # (BTC, 1)
            scale = jnp.float32(1.0 / c)
        else:
            contrib = s12
            scale = jnp.float32(1.0 / (c * hw_total))
        # Segmented sum over the C contiguous rows of each batch element:
        # iota mask + lane broadcast + sublane reduce (no reshape / MXU).
        rowid = lax.broadcasted_iota(jnp.int32, (btc, bt), 0)
        bid = lax.broadcasted_iota(jnp.int32, (btc, bt), 1)
        lo = bid * c
        sel = jnp.logical_and(rowid >= lo, rowid < lo + c)       # (BTC, BT)
        grouped = jnp.where(sel, contrib, jnp.float32(0.0))      # (BTC, BT)
        per_batch = jnp.sum(grouped, axis=0, keepdims=True)      # (1, BT)
        o_ref[0] = (per_batch * scale).astype(o_ref.dtype)

    if kt == 1:
        # Single HW tile: no accumulator round-trip needed.
        if normalize:
            finalize(p12, p1, p2, p11, p22)
        else:
            finalize(p12)
        return

    k = pl.program_id(1)

    @pl.when(k == 0)
    def _():
        s12_ref[...] = jnp.zeros_like(s12_ref)
        if normalize:
            s1_ref[...] = jnp.zeros_like(s1_ref)
            s2_ref[...] = jnp.zeros_like(s2_ref)
            s11_ref[...] = jnp.zeros_like(s11_ref)
            s22_ref[...] = jnp.zeros_like(s22_ref)

    s12_ref[...] += p12
    if normalize:
        s1_ref[...] += p1
        s2_ref[...] += p2
        s11_ref[...] += p11
        s22_ref[...] += p22

    @pl.when(k == kt - 1)
    def _():
        if normalize:
            finalize(s12_ref[...], s1_ref[...], s2_ref[...],
                     s11_ref[...], s22_ref[...])
        else:
            finalize(s12_ref[...])


def _choose_tiling(b, c, hw, elem_bytes, budget_bytes, min_grid):
    """Returns (bt, thw, kt): batch tile, HW tile (lanes) and #HW tiles."""
    hw_lanes = _round_up(hw, _LANE)
    # Rows per vreg: 8 for 4-byte dtypes, 16 for 2-byte (sublane packing).
    sub_mult = _SUBLANE if elem_bytes >= 4 else 2 * _SUBLANE

    def rows(bt):                        # sublane-padded row count of a block
        return _round_up(bt * c, _SUBLANE)

    if rows(1) * hw_lanes * elem_bytes <= budget_bytes:
        # One whole (C, HW) slab fits: fold batch elements into the sublane
        # axis up to the budget, but keep >= min_grid batch-grid steps so the
        # pipeline stays double-buffered and both TCs get work on v7x.
        bt_cap = max(1, b // min_grid)
        best, best_aligned = 1, None
        for bt in range(1, bt_cap + 1):
            if rows(bt) * hw_lanes * elem_bytes > budget_bytes:
                break
            best = bt
            if (bt * c) % sub_mult == 0:
                best_aligned = bt
        bt = best_aligned if best_aligned is not None else best
        return bt, hw, 1

    # A single (C, HW) slab exceeds the budget: keep just enough batch rows to
    # fill the sublane axis and tile the HW axis (reduction grid axis).
    bt = min(b, max(1, -(-_SUBLANE // c)))
    row_bytes = rows(bt) * elem_bytes
    thw = max(_LANE, (budget_bytes // (row_bytes * _LANE)) * _LANE)
    if thw >= hw:
        return bt, hw, 1
    return bt, thw, -(-hw // thw)


def xcorr_same_size(x1, x2, *, zero_mean_normalize: bool = True, eps: float = 1e-5,
                    block_budget_bytes: int = 4 * 1024 * 1024,
                    vmem_limit_bytes=None, min_grid: int = 4):
    """Pallas equivalent of xcorr.match_corr_same_size.

    Args:
      x1, x2: [B, C, H, W] arrays of the same shape (any float dtype).
      block_budget_bytes: per-input HBM->VMEM block target (raise to 8-12 MiB
        on v5e/v6e if desired; keep ~4-6 MiB on v7x's 64 MiB VMEM).
      vmem_limit_bytes: scoped VMEM limit; derived from the block if None.
    Returns:
      scores: [B, 1, 1] float32 correlation scores.
    """
    assert x1.shape == x2.shape, "same-size correlation path only"
    b, c, h, w = x1.shape
    hw = h * w
    elem_bytes = jnp.dtype(x1.dtype).itemsize

    bt, thw, kt = _choose_tiling(b, c, hw, elem_bytes, block_budget_bytes, min_grid)
    bg = -(-b // bt)
    bpad = bg * bt
    btc = bt * c
    needs_mask = (kt > 1) and (hw % thw != 0)

    # Fold BT batch elements into the sublane axis (zero-pad a partial last
    # batch group: zero rows contribute exactly 0 and are sliced off below).
    x1f = x1.reshape(b, c, hw)
    x2f = x2.reshape(b, c, hw)
    if bpad != b:
        pad = ((0, bpad - b), (0, 0), (0, 0))
        x1f = jnp.pad(x1f, pad)
        x2f = jnp.pad(x2f, pad)
    x1f = x1f.reshape(bg, btc, hw)
    x2f = x2f.reshape(bg, btc, hw)

    # Scoped-VMEM limit: 2 inputs x 2 pipeline buffers at the chosen block plus
    # headroom for the in-kernel f32 casts / elementwise products, capped at
    # 56 MiB so the default is safe on 64-MiB-VMEM parts (v7x); v5e/v6e users
    # can pass a larger limit explicitly.
    block_rows = _round_up(btc, _SUBLANE)
    block_lanes = _round_up(thw, _LANE)
    block_bytes = block_rows * block_lanes * elem_bytes
    block_f32_bytes = block_rows * block_lanes * 4
    if vmem_limit_bytes is None:
        vmem_limit_bytes = min(
            56 * 1024 * 1024,
            max(32 * 1024 * 1024,
                4 * block_bytes + 5 * block_f32_bytes + (2 << 20)))

    kernel = functools.partial(
        _xcorr_kernel, c=c, eps=float(eps), normalize=zero_mean_normalize,
        hw_total=hw, thw=thw, kt=kt, needs_mask=needs_mask)

    out = pl.pallas_call(
        kernel,
        out_shape=jax.ShapeDtypeStruct((bg, 1, bt), jnp.float32),
        grid_spec=pltpu.PrefetchScalarGridSpec(
            num_scalar_prefetch=0,
            grid=(bg, kt),
            in_specs=[
                pl.BlockSpec((1, btc, thw), lambda i, k: (i, 0, k)),
                pl.BlockSpec((1, btc, thw), lambda i, k: (i, 0, k)),
            ],
            out_specs=pl.BlockSpec((1, 1, bt), lambda i, k: (i, 0, 0)),
            scratch_shapes=[pltpu.VMEM((btc, 1), jnp.float32)
                            for _ in range(5)],
        ),
        compiler_params=pltpu.CompilerParams(
            dimension_semantics=("parallel", "arbitrary"),
            vmem_limit_bytes=int(vmem_limit_bytes),
        ),
    )(x1f, x2f)

    # (BG, 1, BT) -> (B, 1, 1): row-major flatten preserves batch order.
    return out.reshape(bpad, 1, 1)[:b]


def _reference(x1, x2, eps=1e-5, zero_mean_normalize=True):
    # Pure-JAX reference mirroring the PyTorch module (same-size branch).
    b, c, h, w = x1.shape
    x1 = x1.astype(jnp.float32)
    x2 = x2.astype(jnp.float32)
    if zero_mean_normalize:
        def inorm(x):
            m = jnp.mean(x, axis=(2, 3), keepdims=True)
            v = jnp.mean((x - m) ** 2, axis=(2, 3), keepdims=True)
            return (x - m) / jnp.sqrt(v + eps)
        x1 = inorm(x1)
        x2 = inorm(x2)
    s = jnp.einsum("bchw,bchw->b", x1, x2) / (c * h * w)
    return s.reshape(b, 1, 1)


if __name__ == "__main__":
    # TODO(synk): the different-size branch (match_corr) references
    # self.img_size, which is undefined in the PyTorch module (it would crash);
    # only the same-size branch is implemented.
    key = jax.random.PRNGKey(0)
    k1, k2, k3, k4 = jax.random.split(key, 4)

    # 1) Module-implied small shapes, f32.
    B, C, H, W = 2, 4, 16, 16
    x1 = jax.random.normal(k1, (B, C, H, W), dtype=jnp.float32)
    x2 = jax.random.normal(k2, (B, C, H, W), dtype=jnp.float32)
    out = jax.block_until_ready(xcorr_same_size(x1, x2))
    ref = _reference(x1, x2)
    assert out.shape == (B, 1, 1), out.shape
    assert jnp.allclose(out, ref, atol=1e-4, rtol=1e-4), (out, ref)

    # Non-normalized path (zero_mean_normalize=False).
    out_nn = jax.block_until_ready(
        xcorr_same_size(x1, x2, zero_mean_normalize=False))
    ref_nn = _reference(x1, x2, zero_mean_normalize=False)
    assert jnp.allclose(out_nn, ref_nn, atol=1e-4, rtol=1e-4), (out_nn, ref_nn)

    # bf16 inputs stay bf16 across HBM/DMA; f32 math inside the kernel.
    x1b = x1.astype(jnp.bfloat16)
    x2b = x2.astype(jnp.bfloat16)
    out_bf = jax.block_until_ready(xcorr_same_size(x1b, x2b))
    ref_bf = _reference(x1b, x2b)
    assert jnp.allclose(out_bf, ref_bf, atol=1e-3, rtol=1e-3), (out_bf, ref_bf)

    # 2) Odd batch + non-lane-aligned HW with a tiny block budget: exercises
    #    batch padding, the HW reduction grid axis and the partial-tile mask.
    B2, C2, H2, W2 = 3, 4, 15, 15
    y1 = jax.random.normal(k3, (B2, C2, H2, W2), dtype=jnp.float32)
    y2 = jax.random.normal(k4, (B2, C2, H2, W2), dtype=jnp.float32)
    out2 = jax.block_until_ready(
        xcorr_same_size(y1, y2, block_budget_bytes=4096))
    ref2 = _reference(y1, y2)
    assert out2.shape == (B2, 1, 1), out2.shape
    assert jnp.allclose(out2, ref2, atol=1e-4, rtol=1e-4), (out2, ref2)

    print("KERNEL_OK")
</pallas_src>

<mosaic_0001>
module attributes {stable_mosaic.version = 11 : i64} {
  func.func @_xcorr_kernel(%arg0: i32, %arg1: i32, %arg2: memref<1x4x256xf32, #tpu.memory_space<vmem>>, %arg3: memref<1x4x256xf32, #tpu.memory_space<vmem>>, %arg4: memref<1x1x1xf32, #tpu.memory_space<vmem>>, %arg5: memref<4x1xf32, #tpu.memory_space<vmem>>, %arg6: memref<4x1xf32, #tpu.memory_space<vmem>>, %arg7: memref<4x1xf32, #tpu.memory_space<vmem>>, %arg8: memref<4x1xf32, #tpu.memory_space<vmem>>, %arg9: memref<4x1xf32, #tpu.memory_space<vmem>>) attributes {dimension_semantics = [#tpu.dimension_semantics<parallel>, #tpu.dimension_semantics<arbitrary>], iteration_bounds = array<i64: 2, 1>, scalar_prefetch = 0 : i64, scratch_operands = 5 : i64, tpu.core_type = #tpu.core_type<tc>, window_params = [{transform_indices = @transform_0, window_bounds = array<i64: 1, 4, 256>}, {transform_indices = @transform_1, window_bounds = array<i64: 1, 4, 256>}, {transform_indices = @transform_2, window_bounds = array<i64: 1, 1, 1>}]} {
    %c0 = arith.constant 0 : index
    %c0_0 = arith.constant 0 : index
    %c0_1 = arith.constant 0 : index
    %0 = vector.load %arg2[%c0, %c0_0, %c0_1] : memref<1x4x256xf32, #tpu.memory_space<vmem>>, vector<1x4x256xf32>
    %1 = vector.shape_cast %0 : vector<1x4x256xf32> to vector<4x256xf32>
    %c0_2 = arith.constant 0 : index
    %c0_3 = arith.constant 0 : index
    %c0_4 = arith.constant 0 : index
    %2 = vector.load %arg3[%c0_2, %c0_3, %c0_4] : memref<1x4x256xf32, #tpu.memory_space<vmem>>, vector<1x4x256xf32>
    %3 = vector.shape_cast %2 : vector<1x4x256xf32> to vector<4x256xf32>
    %4 = arith.mulf %1, %3 : vector<4x256xf32>
    %cst = arith.constant dense<0.000000e+00> : vector<4xf32>
    %5 = vector.multi_reduction <add>, %4, %cst [1] : vector<4x256xf32> to vector<4xf32>
    %6 = vector.shape_cast %5 : vector<4xf32> to vector<4x1xf32>
    %cst_5 = arith.constant dense<0.000000e+00> : vector<4xf32>
    %7 = vector.multi_reduction <add>, %1, %cst_5 [1] : vector<4x256xf32> to vector<4xf32>
    %8 = vector.shape_cast %7 : vector<4xf32> to vector<4x1xf32>
    %cst_6 = arith.constant dense<0.000000e+00> : vector<4xf32>
    %9 = vector.multi_reduction <add>, %3, %cst_6 [1] : vector<4x256xf32> to vector<4xf32>
    %10 = vector.shape_cast %9 : vector<4xf32> to vector<4x1xf32>
    %11 = arith.mulf %1, %1 : vector<4x256xf32>
    %cst_7 = arith.constant dense<0.000000e+00> : vector<4xf32>
    %12 = vector.multi_reduction <add>, %11, %cst_7 [1] : vector<4x256xf32> to vector<4xf32>
    %13 = vector.shape_cast %12 : vector<4xf32> to vector<4x1xf32>
    %14 = arith.mulf %3, %3 : vector<4x256xf32>
    %cst_8 = arith.constant dense<0.000000e+00> : vector<4xf32>
    %15 = vector.multi_reduction <add>, %14, %cst_8 [1] : vector<4x256xf32> to vector<4xf32>
    %16 = vector.shape_cast %15 : vector<4xf32> to vector<4x1xf32>
    %cst_9 = arith.constant 3.906250e-03 : f32
    %17 = vector.broadcast %cst_9 : f32 to vector<4x1xf32>
    %18 = arith.mulf %8, %17 : vector<4x1xf32>
    %cst_10 = arith.constant 3.906250e-03 : f32
    %19 = vector.broadcast %cst_10 : f32 to vector<4x1xf32>
    %20 = arith.mulf %10, %19 : vector<4x1xf32>
    %cst_11 = arith.constant 3.906250e-03 : f32
    %21 = vector.broadcast %cst_11 : f32 to vector<4x1xf32>
    %22 = arith.mulf %13, %21 : vector<4x1xf32>
    %23 = arith.mulf %18, %18 : vector<4x1xf32>
    %24 = arith.subf %22, %23 : vector<4x1xf32>
    %cst_12 = arith.constant 0.000000e+00 : f32
    %25 = vector.broadcast %cst_12 : f32 to vector<4x1xf32>
    %26 = arith.maximumf %24, %25 : vector<4x1xf32>
    %cst_13 = arith.constant 3.906250e-03 : f32
    %27 = vector.broadcast %cst_13 : f32 to vector<4x1xf32>
    %28 = arith.mulf %16, %27 : vector<4x1xf32>
    %29 = arith.mulf %20, %20 : vector<4x1xf32>
    %30 = arith.subf %28, %29 : vector<4x1xf32>
    %cst_14 = arith.constant 0.000000e+00 : f32
    %31 = vector.broadcast %cst_14 : f32 to vector<4x1xf32>
    %32 = arith.maximumf %30, %31 : vector<4x1xf32>
    %cst_15 = arith.constant 3.906250e-03 : f32
    %33 = vector.broadcast %cst_15 : f32 to vector<4x1xf32>
    %34 = arith.mulf %6, %33 : vector<4x1xf32>
    %35 = arith.mulf %18, %20 : vector<4x1xf32>
    %36 = arith.subf %34, %35 : vector<4x1xf32>
    %cst_16 = arith.constant 9.99999974E-6 : f32
    %37 = vector.broadcast %cst_16 : f32 to vector<4x1xf32>
    %38 = arith.addf %26, %37 : vector<4x1xf32>
    %39 = math.rsqrt %38 : vector<4x1xf32>
    %40 = arith.mulf %36, %39 : vector<4x1xf32>
    %cst_17 = arith.constant 9.99999974E-6 : f32
    %41 = vector.broadcast %cst_17 : f32 to vector<4x1xf32>
    %42 = arith.addf %32, %41 : vector<4x1xf32>
    %43 = math.rsqrt %42 : vector<4x1xf32>
    %44 = arith.mulf %40, %43 : vector<4x1xf32>
    %45 = tpu.iota {dimensions = array<i32: 0>} : vector<4x1xi32>
    %46 = tpu.iota {dimensions = array<i32: 1>} : vector<4x1xi32>
    %c4_i32 = arith.constant 4 : i32
    %47 = vector.broadcast %c4_i32 : i32 to vector<4x1xi32>
    %48 = arith.muli %46, %47 : vector<4x1xi32>
    %49 = arith.cmpi sge, %45, %48 : vector<4x1xi32>
    %c4_i32_18 = arith.constant 4 : i32
    %50 = vector.broadcast %c4_i32_18 : i32 to vector<4x1xi32>
    %51 = arith.addi %48, %50 : vector<4x1xi32>
    %52 = arith.cmpi slt, %45, %51 : vector<4x1xi32>
    %53 = arith.andi %49, %52 : vector<4x1xi1>
    %cst_19 = arith.constant 0.000000e+00 : f32
    %54 = vector.broadcast %cst_19 : f32 to vector<4x1xf32>
    %55 = arith.select %53, %44, %54 : vector<4x1xi1>, vector<4x1xf32>
    %cst_20 = arith.constant dense<0.000000e+00> : vector<1xf32>
    %56 = vector.multi_reduction <add>, %55, %cst_20 [0] : vector<4x1xf32> to vector<1xf32>
    %57 = vector.shape_cast %56 : vector<1xf32> to vector<1x1xf32>
    %cst_21 = arith.constant 2.500000e-01 : f32
    %58 = vector.broadcast %cst_21 : f32 to vector<1x1xf32>
    %59 = arith.mulf %57, %58 : vector<1x1xf32>
    %c0_22 = arith.constant 0 : index
    %c0_23 = arith.constant 0 : index
    %c0_24 = arith.constant 0 : index
    %60 = vector.load %arg4[%c0_22, %c0_23, %c0_24] : memref<1x1x1xf32, #tpu.memory_space<vmem>>, vector<1x1x1xf32>
    %61 = vector.shape_cast %60 : vector<1x1x1xf32> to vector<1x1xf32>
    %62 = vector.shape_cast %59 : vector<1x1xf32> to vector<1x1x1xf32>
    tpu.vector_store %arg4[%c0_22, %c0_23, %c0_24], %62 {strides = array<i32>} : memref<1x1x1xf32, #tpu.memory_space<vmem>>, vector<1x1x1xf32>,
    return
  }
  func.func @transform_0(%arg0: i32, %arg1: i32) -> (i32, i32, i32) {
    %c0_i32 = arith.constant 0 : i32
    %c0_i32_0 = arith.constant 0 : i32
    return %arg0, %c0_i32, %arg1 : i32, i32, i32
  }
  func.func @transform_1(%arg0: i32, %arg1: i32) -> (i32, i32, i32) {
    %c0_i32 = arith.constant 0 : i32
    %c0_i32_0 = arith.constant 0 : i32
    return %arg0, %c0_i32, %arg1 : i32, i32, i32
  }
  func.func @transform_2(%arg0: i32, %arg1: i32) -> (i32, i32, i32) {
    %c0_i32 = arith.constant 0 : i32
    %c0_i32_0 = arith.constant 0 : i32
    %c0_i32_1 = arith.constant 0 : i32
    return %arg0, %c0_i32, %c0_i32_0 : i32, i32, i32
  }
}

</mosaic_0001>

<bundles_post_ra>
// kernel: tpu_custom_call.1
= control target key start
LH: loop header
LB: loop body
LE: loop exit
PB: predicated region body
PF: predicated region fallthrough
CT: control target
= control target key end

     0   :  { %7 = vsyncpa [#allocation8], 0  ;;  %s745_s0 = inlined_call_operand.hbm [shape: f32[2,4,256], index: 0, kind: input, shape index: {}]   ;;  %s746_s1 = inlined_call_operand.hbm [shape: f32[2,4,256], index: 1, kind: input, shape index: {}]   ;;  %s747_s2 = inlined_call_operand.vmem [shape: f32[2,1,1], index: 2, kind: output, shape index: {}]  }
   0x1   :  { %9 = vsyncpa [#allocation8 + $0x1], 0 }
   0x2   :  { %10 = vsyncpa [#allocation10], 0 }
   0x3   :  { %12 = vsyncpa [#allocation10 + $0x1], 0  ;;  %s609_s9 = smov 0   ;;  %s611_s10 = smov 0  }
   0x4   :  { %s613_s11 = smov 0   ;;  %s615_s12 = smov 0  }
   0x5   :  { %s617_s13 = smov 0   ;;  %s619_s14 = smov 0  }
   0x6 LB: > { %s397_s15 = sadd.s32 4294967295, %s590_s14   ;;  %s30_s16 = sadd.s32 1, %s586_s13  ;;  %s590_s14 = sphi %s619_s14, %s18_s14   ;;  %s586_s13 = sphi %s617_s13, %s756_s13   ;;  %s582_s12 = sphi %s615_s12, %s755_s12   ;;  %s578_s11 = sphi %s613_s11, %s754_s11   ;;  %s574_s10 = sphi %s611_s10, %s753_s10   ;;  %s570_s9 = sphi %s609_s9, %s752_s9  }
   0x7   : > { %p32_p0 = scmp.ge.s32.totalorder %s30_s16, 2  ;;  %s39_s17 = sadd.s32 1, %s578_s11 }
   0x8   : > { %p46_p1 = scmp.ne.s32.totalorder %s578_s11, %s574_s10  ;;  %p47_p2 = scmp.eq.s32.totalorder %s590_s14, 0 }
   0x9   : > { %s758_s16 = smov (%p32_p0, %s30_s16), 0  ;;  %p52_p4 = scmp.ne.s32.totalorder %s574_s10, %s570_s9 }
   0xa   : > { %p645_p3 = por %p47_p2, %p46_p1  ;;  %s34_s19 = ssub.s32 %s586_s13, %s758_s16 }
   0xb   : > { %p53_p5 = scmp.eq.s32.totalorder %s397_s15, 0  ;;  %p37_p6 = scmp.eq.s32.totalorder %s34_s19, 0 }
   0xc   : > { %p425_p8 = scmp.lt.s32.totalorder %s590_s14, 2  ;;  %s661_s22 = sand.u32 1, %s578_s11  }
   0xd   : > { %p652_p7 = por %p53_p5, %p52_p4  ;;  %s412_s23 = sshll.u32 %s586_s13, 7 }
   0xe   : > { %s658_s21 = scalar_select %p37_p6, %s578_s11, %s39_s17  }
   0xf   : > { %s401_s24 = sshll.u32 %s661_s22, 3  ;;  %s142_s27 = scalar_lea.hbm %s745_s0, %s412_s23 }
  0x10   : > { %s134_s28 = scalar_lea.vmem [#allocation7], %s401_s24  ;;  %p670_p9 = pnand %p425_p8, %p645_p3 }
  0x11   : > { %s144_s29 = sshll.u32 %s134_s28, 4  ;;  %p407_p10 = scmp.ge.s32.totalorder %s590_s14, 1  ;;  %s145_s29 = int_to_ptr.vmem [resolvable:$true] %s144_s29 }
  0x12   : > { %p170_p11 = scmp.lt.s32.totalorder %s590_s14, 3  ;;  %s131_s3 = scalar_lea.sflag [#allocation8], %s661_s22 }
  0x13   : > { %p482_p12 = pneg %p670_p9  ;;  %s493_s4 = scalar_lea.vmem %s145_s29, 128 }
  0x14   : > { %p494_p13 = scmp.ne.s32.totalorder %s145_s29, %s493_s4  ;;  %s592_s5 = smov [#allocation7]  }
  0x15   : > { %s498_s6 = sshll.u32 %s592_s5, 4  ;;  %s499_s6 = int_to_ptr.vmem [resolvable:$false] %s498_s6 }
  0x16   : > { %p496_p0 = pnand %p494_p13, %p482_p12  ;;  %s500_s7 = scalar_lea.vmem %s499_s6, 256 }
  0x17   : > { %p501_p2 = scmp.lt.s32.totalorder %s145_s29, %s499_s6  ;;  %p502_p3 = scmp.lt.s32.totalorder %s500_s7, %s493_s4 }
  0x18   : > { %p497_p1 = pneg %p496_p0 }
  0x19   : > { %p503_p4 = por %p502_p3, %p501_p2 }
  0x1b   : > { %p504_p5 = pnand %p503_p4, %p497_p1 }
  0x1d   : > { %507 = shalt.err (!%p504_p5)
}
  0x1e   : > { %421 = dma.hbm_to_vmem [thread:$0]  (!%p670_p9), %s142_s27, 128, %s145_s29, %s131_s3  }
  0x1f   : > { %p688_p6 = pnand %p407_p10, %p170_p11  ;;  %s163_s17 = scalar_lea.hbm %s746_s1, %s412_s23 }
  0x20   : > { %s155_s18 = scalar_lea.vmem [#allocation9], %s401_s24  ;;  %s152_s25 = scalar_lea.sflag [#allocation10], %s661_s22 }
  0x21   : > { %s165_s19 = sshll.u32 %s155_s18, 4  ;;  %s593_s27 = smov [#allocation9]   ;;  %s166_s19 = int_to_ptr.vmem [resolvable:$true] %s165_s19 }
  0x22   : > { %s521_s26 = scalar_lea.vmem %s166_s19, 128  ;;  %s526_s28 = sshll.u32 %s593_s27, 4  ;;  %s527_s28 = int_to_ptr.vmem [resolvable:$false] %s526_s28 }
  0x23   : > { %p522_p8 = scmp.ne.s32.totalorder %s166_s19, %s521_s26  ;;  %s528_s29 = scalar_lea.vmem %s527_s28, 256 }
  0x24   : > { %p529_p10 = scmp.lt.s32.totalorder %s166_s19, %s527_s28  ;;  %p530_p11 = scmp.lt.s32.totalorder %s528_s29, %s521_s26 }
  0x25   : > { %p524_p13 = pnand %p522_p8, %p482_p12 }
  0x26   : > { %p531_p1 = por %p530_p11, %p529_p10 }
  0x27   : > { %p525_p0 = pneg %p524_p13 }
  0x29   : > { %p532_p2 = pnand %p531_p1, %p525_p0 }
  0x2b   : > { %535 = shalt.err (!%p532_p2)
}
  0x2c   : > { %424 = dma.hbm_to_vmem [thread:$0]  (!%p670_p9), %s163_s17, 128, %s166_s19, %s152_s25  }
  0x2d   : > { %174 = sbr.rel (%p688_p6) target bundleno = 244 (0xf4), region = 28  ;;  %s176_s22 = sand.u32 (!%p688_p6), 1, %s574_s10  }
  0x2e   : > { %s408_s23 = sshll.u32 (!%p688_p6), %s176_s22, 3  ;;  %s177_s24 = scalar_lea.sflag (!%p688_p6), [#allocation8], %s176_s22 }
  0x2f   : > { %s180_s3 = scalar_lea.vmem (!%p688_p6), [#allocation7], %s408_s23 }
  0x32   : > { %561 = dma.done.wait (%p652_p7), %s177_s24, 128  }
  0x33   : > { %563 = vsyncadd (%p652_p7), %s177_s24, 4294967168  ;;  %s186_s4 = scalar_lea.sflag [#allocation10], %s176_s22  ;;  %s189_s5 = scalar_lea.vmem [#allocation9], %s408_s23 }
  0x34   : > { %565 = dma.done.wait (%p652_p7), %s186_s4, 128  }
  0x35   : > { %567 = vsyncadd (%p652_p7), %s186_s4, 4294967168  ;;  %vm224_vm0 = vcmask 1043456   ;;  %v218_v0 = vld [vmem:[%s180_s3] sm:$0xff]  ;;  %v219_v1 = vld [vmem:[%s189_s5] sm:$0xff]  ;;  %v283_v39 = vlaneseq  ;;  %vm293_vm4 = vcmask 3072   ;;  %p215_p7 = scmp.lt.s32.totalorder %s582_s12, 1 }
  0x36   : > { %v231_v2 = vcombine.high %v218_v0, %v218_v0  ;;  %v233_v3 = vsel %vm224_vm0, %v218_v0, 0.0  ;;  %v246_v4 = vmul.f32 %v218_v0, %v218_v0  ;;  %v239_v5 = vcombine.high %v219_v1, %v219_v1 }
  0x37   : > { %v241_v6 = vsel %vm224_vm0, %v219_v1, 0.0  ;;  %v255_v7 = vmul.f32 %v219_v1, %v219_v1  ;;  %v220_v8 = vmul.f32 %v219_v1, %v218_v0  ;;  %v286_v42 = vand.u32 127, %v283_v39  ;;  %s760_s12 = smov (!%p215_p7, %s582_s12), 1 }
  0x38   : > { %v234_v9 = vsel %vm224_vm0, %v231_v2, 0.0  ;;  %v248_v10 = vcombine.high %v246_v4, %v246_v4  ;;  %v250_v11 = vsel %vm224_vm0, %v246_v4, 0.0  ;;  %v242_v12 = vsel %vm224_vm0, %v239_v5, 0.0  ;;  %s217_s6 = scalar_lea.vmem %s747_s2, %s760_s12 }
  0x39   : > { %v235_v13 = vadd.f32 %v234_v9, %v233_v3  ;;  %v257_v14 = vcombine.high %v255_v7, %v255_v7  ;;  %v259_v16 = vsel %vm224_vm0, %v255_v7, 0.0  ;;  %v222_v17 = vcombine.high %v220_v8, %v220_v8 }
  0x3a   : > { %v251_v15 = vsel %vm224_vm0, %v248_v10, 0.0  ;;  %v243_v19 = vadd.f32 %v242_v12, %v241_v6  ;;  %v225_v21 = vsel %vm224_vm0, %v220_v8, 0.0  ;;  %v287_v43 = vmul.u32 4, %v286_v42 }
  0x3b   : > { %236 = vadd.xlane.f32.xlu0 %v235_v13  ;;  %v252_v18 = vadd.f32 %v251_v15, %v250_v11  ;;  %v260_v20 = vsel %vm224_vm0, %v257_v14, 0.0  ;;  %v226_v22 = vsel %vm224_vm0, %v222_v17, 0.0  ;;  %v284_v45 = vshrl.u32 %v283_v39, 7 }
  0x3c   : > { %v261_v23 = vadd.f32 %v260_v20, %v259_v16  ;;  %v227_v24 = vadd.f32 %v226_v22, %v225_v21  ;;  %v289_v46 = vadd.s32 4, %v287_v43  ;;  %vm302_vm5 = vcmask 0  }
  0x3d   : > { %253 = vadd.xlane.f32.xlu1 %v252_v18  ;;  %vm288_vm1 = vcmp.ge.s32.totalorder %v284_v45, %v287_v43 }
  0x3e   : > { %vm290_vm2 = vcmp.lt.s32.totalorder %v284_v45, %v289_v46 }
  0x3f   : > { %244 = vadd.xlane.f32.xlu0 %v243_v19  ;;  %vm291_vm3 = vmand %vm288_vm1, %vm290_vm2 }
  0x41   : > { %262 = vadd.xlane.f32.xlu1 %v261_v23 }
  0x43   : > { %228 = vadd.xlane.f32.xlu0 %v227_v24 }
  0xc4   : > { %v237_v25 = vpop.xlane.xlu0 %236 }
  0xc5   : > { %v264_v26 = vmul.f32 0.00390625, %v237_v25 }
  0xc6   : > { %v254_v27 = vpop.xlane.xlu1 %253 }
  0xc7   : > { %v267_v28 = vmul.f32 %v264_v26, %v264_v26  ;;  %v266_v29 = vmul.f32 0.00390625, %v254_v27 }
  0xc8   : > { %v245_v30 = vpop.xlane.xlu0 %244 }
  0xc9   : > { %v268_v31 = vsub.f32 %v266_v29, %v267_v28  ;;  %v265_v32 = vmul.f32 0.00390625, %v245_v30 }
  0xca   : > { %v263_v33 = vpop.xlane.xlu1 %262 }
  0xcb   : > { %v269_v34 = vmax.f32 %v268_v31, 0.0  ;;  %v271_v35 = vmul.f32 %v265_v32, %v265_v32  ;;  %v270_v36 = vmul.f32 0.00390625, %v263_v33  ;;  %v275_v48 = vmul.f32 %v265_v32, %v264_v26 }
  0xcc   : > { %v229_v44 = vpop.xlane.xlu0 %228 }
  0xcd   : > { %v277_v37 = vadd.f32 1e-05, %v269_v34  ;;  %v272_v38 = vsub.f32 %v270_v36, %v271_v35  ;;  %v274_v47 = vmul.f32 0.00390625, %v229_v44 }
  0xcf   : > { %476 = vrsqrt.f32 %v277_v37  ;;  %v273_v40 = vmax.f32 %v272_v38, 0.0  ;;  %v276_v50 = vsub.f32 %v274_v47, %v275_v48 }
  0xd1   : > { %v280_v41 = vadd.f32 1e-05, %v273_v40 }
  0xd3   : > { %478 = vrsqrt.f32 %v280_v41 }
  0xdc   : > { %v477_v49 = vpop.eup %476 }
  0xdd   : > { %v279_v51 = vmul.f32 %v477_v49, %v276_v50 }
  0xe0   : > { %v479_v52 = vpop.eup %478 }
  0xe1   : > { %v282_v53 = vmul.f32 %v479_v52, %v279_v51 }
  0xe3   : > { %v292_v54 = vsel %vm291_vm3, %v282_v53, 0.0 }
  0xe4   : > { %v294_v55 = vsel %vm293_vm4, %v292_v54, 0.0 }
  0xe5   : > { %v295_v56 = vrot.slane %v294_v55, 4 }
  0xe7   : > { %v296_v57 = vadd.f32 %v295_v56, %v294_v55 }
  0xe9   : > { %v297_v58 = vrot.slane %v296_v57, 2 }
  0xeb   : > { %v298_v59 = vadd.f32 %v297_v58, %v296_v57 }
  0xed   : > { %v299_v60 = vrot.slane %v298_v59, 1 }
  0xef   : > { %v300_v61 = vadd.f32 %v299_v60, %v298_v59 }
  0xf1   : > { %v301_v62 = vmul.f32 0.25, %v300_v61 }
  0xf3   : > { %303 = vst.msk [vmem:[%s217_s6] sm:$0x1] %vm302_vm5, %v301_v62 }
  0xf4 PF: > { %s18_s14 = sadd.s32 1, %s590_s14   ;;  %s752_s9 = smov %s574_s10 }
  0xf5   : > { %p15_p9 = scmp.ge.s32.totalorder %s18_s14, 4   ;;  %s753_s10 = smov %s578_s11 }
  0xf6   : > { %s754_s11 = smov %s658_s21  ;;  %s755_s12 = smov %s586_s13 }
  0xf7   : > { %s756_s13 = smov %s758_s16  ;;  %17 = sbr.rel (!%p15_p9) target bundleno = 6 (0x6), region = 81 }
  0xfc   :  { %321 = vsyncpa [#allocation8], 1 }
  0xfd   :  { %323 = vsyncpa [#allocation8 + $0x1], 1 }
  0xfe   :  { %324 = vsyncpa [#allocation10], 1 }
  0xff   :  { %326 = vsyncpa [#allocation10 + $0x1], 1 }

</bundles_post_ra>
